<compile_context>
chip_gen: v5e
topology: v5e:2x2
jax: 0.10.0
libtpu: 0.0.40
codegen_flags: <defaults>
</compile_context>

<pallas_src>
import functools

import jax
import jax.numpy as jnp
import numpy as np
from jax import lax
from jax.experimental import pallas as pl
from jax.experimental.pallas import tpu as pltpu


def _ffn_kernel(x_ref, w1_ref, b1_ref, w2_ref, b2_ref, g_ref, beta_ref,
                o_ref, acc_ref, *, eps):
    """One (row-tile i, H-tile k) grid step.

    x_ref : (tm, D)    w1_ref: (D, th)   b1_ref: (1, th)
    w2_ref: (th, D)    b2_ref: (1, D)    g_ref/beta_ref: (1, D)
    o_ref : (tm, D)    acc_ref: (tm, D) f32 scratch, persistent across k
    """
    k = pl.program_id(1)

    @pl.when(k == 0)
    def _init():
        acc_ref[...] = jnp.zeros_like(acc_ref)

    x = x_ref[...]
    # Feed the MXU operands in their native dtype (bf16 runs at full rate);
    # f32 accumulation comes from preferred_element_type, not an up-cast.
    x_mm = x if x.dtype == w1_ref.dtype else x.astype(w1_ref.dtype)

    h = jnp.dot(x_mm, w1_ref[...], preferred_element_type=jnp.float32)
    h = jnp.maximum(h + b1_ref[...].astype(jnp.float32), 0.0)
    h = h if h.dtype == w2_ref.dtype else h.astype(w2_ref.dtype)
    acc_ref[...] += jnp.dot(h, w2_ref[...], preferred_element_type=jnp.float32)

    @pl.when(k == pl.num_programs(1) - 1)
    def _finalize():
        y = acc_ref[...] + b2_ref[...].astype(jnp.float32)
        r = x.astype(jnp.float32) + y                     # residual add (f32)
        mean = jnp.mean(r, axis=-1, keepdims=True)
        cent = r - mean
        var = jnp.mean(cent * cent, axis=-1, keepdims=True)
        norm = cent * lax.rsqrt(var + eps)
        out = (norm * g_ref[...].astype(jnp.float32)
               + beta_ref[...].astype(jnp.float32))
        o_ref[...] = out.astype(o_ref.dtype)


def _vmem_budget_bytes():
    """Generation-aware scoped-VMEM budget (leave ~20% headroom for the compiler)."""
    cap = None
    try:
        cap = int(getattr(pltpu.get_tpu_info(), "vmem_capacity_bytes", 0)) or None
    except Exception:
        cap = None
    if cap is None:
        cap = 64 << 20                      # conservative: v7x per-TensorCore VMEM
    return int(min(cap * 4 // 5, 100 << 20))


def _footprint_bytes(tm, th, D, act_bytes, w_bytes):
    x_tile = 2 * tm * D * act_bytes                 # x row tile, double-buffered
    o_tile = 2 * tm * D * act_bytes                 # out row tile, double-buffered
    w_tiles = 2 * (D * th + th * D + th) * w_bytes  # W1/W2/b1 H-tiles, streamed + dbl-buffered
    small = 4 * 2 * D * 4                           # b2 / gamma / beta (+ slack)
    acc = tm * D * 4                                # f32 accumulator scratch
    live = tm * th * 4 + 2 * tm * D * 4             # live h intermediate + LN temporaries
    return x_tile + o_tile + w_tiles + small + acc + live


def _pick_tiles(M, D, H, x_dtype, w_dtype, budget, tm_req=None, th_req=None):
    act_b = jnp.dtype(x_dtype).itemsize
    w_b = jnp.dtype(w_dtype).itemsize
    row_align = 16 if act_b < 4 else 8              # sublane packing for narrow dtypes

    # H tile: prefer multiples of 256 (fills the 256x256 MXU on v6e/v7x),
    # then 128-multiples, else the full (small) H.
    th_cands = [t for t in (2048, 1024, 512, 256, 128) if t <= H and H % t == 0]
    if not th_cands:
        th_cands = [H]
    if th_req is not None:
        th_cands = [int(th_req)]

    # Row tile: large (amortize ~0.35us/step + MXU fill/drain), capped at 1024,
    # but keep >= 2 row tiles when M allows so both v7x TensorCores get work.
    if tm_req is not None:
        tm = int(tm_req)
    elif M <= row_align:
        tm = M                                      # == full dim, always layout-legal
    else:
        tm = min(1024, pl.cdiv(M, 2))
        tm = ((tm + row_align - 1) // row_align) * row_align
        tm = min(tm, ((M + row_align - 1) // row_align) * row_align)

    # Shrink th first (keeps the row tile large), then tm, until VMEM fits.
    th = th_cands[0]
    for cand in th_cands:
        th = cand
        if _footprint_bytes(tm, th, D, act_b, w_b) <= budget:
            break
    while _footprint_bytes(tm, th, D, act_b, w_b) > budget and tm > row_align:
        tm = max(row_align, ((tm // 2 + row_align - 1) // row_align) * row_align)
    return tm, th


def ffn_pallas(x, w1, b1, w2, b2, gamma, beta, *, eps=1e-5, tm=None, th=None):
    """x: [M, D] token-major activations. Returns [M, D]."""
    M, D = x.shape
    H = w1.shape[1]

    budget = _vmem_budget_bytes()
    tm, th = _pick_tiles(M, D, H, x.dtype, w1.dtype, budget, tm, th)
    grid = (pl.cdiv(M, tm), pl.cdiv(H, th))         # ragged tails -> Pallas partial-block masking

    act_b = jnp.dtype(x.dtype).itemsize
    w_b = jnp.dtype(w1.dtype).itemsize
    flops = 4 * M * D * H + 10 * M * D              # two GEMMs + elementwise/LN
    bytes_accessed = (2 * M * D * act_b                        # x in + out
                      + grid[0] * (D * H + H * D + H) * w_b    # streamed weights per row tile
                      + 3 * D * 4)
    cost = pl.CostEstimate(flops=int(flops), transcendentals=int(M),
                           bytes_accessed=int(bytes_accessed))

    kernel = functools.partial(_ffn_kernel, eps=eps)

    out = pl.pallas_call(
        kernel,
        out_shape=jax.ShapeDtypeStruct((M, D), x.dtype),
        grid_spec=pltpu.PrefetchScalarGridSpec(
            num_scalar_prefetch=0,
            grid=grid,
            in_specs=[
                pl.BlockSpec((tm, D), lambda i, k: (i, 0)),    # x row tile (resident over k)
                pl.BlockSpec((D, th), lambda i, k: (0, k)),    # W1 H-tile (streamed)
                pl.BlockSpec((1, th), lambda i, k: (0, k)),    # b1 H-tile (streamed)
                pl.BlockSpec((th, D), lambda i, k: (k, 0)),    # W2 H-tile (streamed)
                pl.BlockSpec((1, D), lambda i, k: (0, 0)),     # b2
                pl.BlockSpec((1, D), lambda i, k: (0, 0)),     # layernorm gamma
                pl.BlockSpec((1, D), lambda i, k: (0, 0)),     # layernorm beta
            ],
            out_specs=pl.BlockSpec((tm, D), lambda i, k: (i, 0)),
            scratch_shapes=[pltpu.VMEM((tm, D), jnp.float32)],
        ),
        compiler_params=pltpu.CompilerParams(
            dimension_semantics=("parallel", "arbitrary"),
            vmem_limit_bytes=int(budget)),
        cost_estimate=cost,
    )(x, w1, b1, w2, b2, gamma, beta)
    return out


def ffn_forward(x, w1, b1, w2, b2, gamma, beta, *, eps=1e-5, tm=None, th=None):
    """x: [..., D] (e.g. [B, S, D]); flattens leading dims into token rows."""
    lead = x.shape[:-1]
    D = x.shape[-1]
    out2d = ffn_pallas(x.reshape(-1, D), w1, b1, w2, b2, gamma, beta,
                       eps=eps, tm=tm, th=th)
    return out2d.reshape(*lead, D)


def ffn_reference(x, w1, b1, w2, b2, gamma, beta, eps=1e-5):
    h = jnp.maximum(x @ w1 + b1, 0.0)
    r = x + (h @ w2 + b2)
    mean = jnp.mean(r, axis=-1, keepdims=True)
    var = jnp.mean((r - mean) ** 2, axis=-1, keepdims=True)
    return (r - mean) / jnp.sqrt(var + eps) * gamma + beta


if __name__ == "__main__":
    # Module config: FFN(input_size=32); forward on inputs [batch, seq, input_size].
    B, S, D = 2, 8, 32
    H = 4 * D

    key = jax.random.PRNGKey(0)
    kx, k1, kb1, k2, kb2 = jax.random.split(key, 5)

    x = jax.random.normal(kx, (B, S, D), dtype=jnp.float32)

    # Deterministic parameter init (PyTorch Linear-style uniform bounds).
    bound1 = 1.0 / np.sqrt(D)
    w1 = jax.random.uniform(k1, (D, H), jnp.float32, -bound1, bound1)
    b1 = jax.random.uniform(kb1, (1, H), jnp.float32, -bound1, bound1)
    bound2 = 1.0 / np.sqrt(H)
    w2 = jax.random.uniform(k2, (H, D), jnp.float32, -bound2, bound2)
    b2 = jax.random.uniform(kb2, (1, D), jnp.float32, -bound2, bound2)
    gamma = jnp.ones((1, D), jnp.float32)   # nn.LayerNorm default weight
    beta = jnp.zeros((1, D), jnp.float32)   # nn.LayerNorm default bias

    out = ffn_forward(x, w1, b1, w2, b2, gamma, beta)
    jax.block_until_ready(out)

    ref = ffn_reference(x.reshape(B * S, D), w1, b1, w2, b2, gamma, beta).reshape(B, S, D)
    np.testing.assert_allclose(np.asarray(out), np.asarray(ref),
                               rtol=1e-5, atol=1e-5)
    print("KERNEL_OK")
</pallas_src>

<mosaic_0001>
module attributes {stable_mosaic.version = 11 : i64} {
  func.func @_ffn_kernel(%arg0: i32, %arg1: i32, %arg2: memref<8x32xf32, #tpu.memory_space<vmem>>, %arg3: memref<32x128xf32, #tpu.memory_space<vmem>>, %arg4: memref<1x128xf32, #tpu.memory_space<vmem>>, %arg5: memref<128x32xf32, #tpu.memory_space<vmem>>, %arg6: memref<1x32xf32, #tpu.memory_space<vmem>>, %arg7: memref<1x32xf32, #tpu.memory_space<vmem>>, %arg8: memref<1x32xf32, #tpu.memory_space<vmem>>, %arg9: memref<8x32xf32, #tpu.memory_space<vmem>>, %arg10: memref<8x32xf32, #tpu.memory_space<vmem>>) attributes {dimension_semantics = [#tpu.dimension_semantics<parallel>, #tpu.dimension_semantics<arbitrary>], iteration_bounds = array<i64: 2, 1>, scalar_prefetch = 0 : i64, scratch_operands = 1 : i64, tpu.core_type = #tpu.core_type<tc>, window_params = [{transform_indices = @transform_0, window_bounds = array<i64: 8, 32>}, {transform_indices = @transform_1, window_bounds = array<i64: 32, 128>}, {transform_indices = @transform_2, window_bounds = array<i64: 1, 128>}, {transform_indices = @transform_3, window_bounds = array<i64: 128, 32>}, {pipeline_mode = #tpu.pipeline_mode<synchronous>, transform_indices = @transform_4, window_bounds = array<i64: 1, 32>}, {pipeline_mode = #tpu.pipeline_mode<synchronous>, transform_indices = @transform_5, window_bounds = array<i64: 1, 32>}, {pipeline_mode = #tpu.pipeline_mode<synchronous>, transform_indices = @transform_6, window_bounds = array<i64: 1, 32>}, {transform_indices = @transform_7, window_bounds = array<i64: 8, 32>}]} {
    %c0_i32 = arith.constant 0 : i32
    %0 = arith.cmpi eq, %arg1, %c0_i32 : i32
    %1 = arith.extui %0 : i1 to i32
    %c0_i32_0 = arith.constant 0 : i32
    %2 = arith.cmpi ne, %1, %c0_i32_0 : i32
    scf.if %2 {
      %cst_16 = arith.constant 0.000000e+00 : f32
      %19 = vector.broadcast %cst_16 : f32 to vector<8x32xf32>
      %c0_17 = arith.constant 0 : index
      %c0_18 = arith.constant 0 : index
      %20 = vector.load %arg10[%c0_17, %c0_18] : memref<8x32xf32, #tpu.memory_space<vmem>>, vector<8x32xf32>
      tpu.vector_store %arg10[%c0_17, %c0_18], %19 {strides = array<i32>} : memref<8x32xf32, #tpu.memory_space<vmem>>, vector<8x32xf32>,
    } else {
    }
    %c0 = arith.constant 0 : index
    %c0_1 = arith.constant 0 : index
    %3 = vector.load %arg2[%c0, %c0_1] : memref<8x32xf32, #tpu.memory_space<vmem>>, vector<8x32xf32>
    %c0_2 = arith.constant 0 : index
    %c0_3 = arith.constant 0 : index
    %4 = vector.load %arg3[%c0_2, %c0_3] : memref<32x128xf32, #tpu.memory_space<vmem>>, vector<32x128xf32>
    %cst = arith.constant dense<0.000000e+00> : vector<8x128xf32>
    %5 = tpu.matmul %3, %4, %cst {dimension_numbers = #tpu.dot_dimension_numbers<[1], [0], [0], [1], [0, 0, 1, 1], [], []>} : vector<8x32xf32>, vector<32x128xf32>, vector<8x128xf32> -> vector<8x128xf32>
    %c0_4 = arith.constant 0 : index
    %c0_5 = arith.constant 0 : index
    %6 = vector.load %arg4[%c0_4, %c0_5] : memref<1x128xf32, #tpu.memory_space<vmem>>, vector<1x128xf32>
    %7 = vector.broadcast %6 : vector<1x128xf32> to vector<8x128xf32>
    %8 = arith.addf %5, %7 : vector<8x128xf32>
    %cst_6 = arith.constant 0.000000e+00 : f32
    %9 = vector.broadcast %cst_6 : f32 to vector<8x128xf32>
    %10 = arith.maximumf %8, %9 : vector<8x128xf32>
    %c0_7 = arith.constant 0 : index
    %c0_8 = arith.constant 0 : index
    %11 = vector.load %arg10[%c0_7, %c0_8] : memref<8x32xf32, #tpu.memory_space<vmem>>, vector<8x32xf32>
    %c0_9 = arith.constant 0 : index
    %c0_10 = arith.constant 0 : index
    %12 = vector.load %arg5[%c0_9, %c0_10] : memref<128x32xf32, #tpu.memory_space<vmem>>, vector<128x32xf32>
    %cst_11 = arith.constant dense<0.000000e+00> : vector<8x32xf32>
    %13 = tpu.matmul %10, %12, %cst_11 {dimension_numbers = #tpu.dot_dimension_numbers<[1], [0], [0], [1], [0, 0, 1, 1], [], []>} : vector<8x128xf32>, vector<128x32xf32>, vector<8x32xf32> -> vector<8x32xf32>
    %14 = arith.addf %11, %13 : vector<8x32xf32>
    %c0_12 = arith.constant 0 : index
    %c0_13 = arith.constant 0 : index
    %15 = vector.load %arg10[%c0_12, %c0_13] : memref<8x32xf32, #tpu.memory_space<vmem>>, vector<8x32xf32>
    tpu.vector_store %arg10[%c0_12, %c0_13], %14 {strides = array<i32>} : memref<8x32xf32, #tpu.memory_space<vmem>>, vector<8x32xf32>,
    %c0_i32_14 = arith.constant 0 : i32
    %16 = arith.cmpi eq, %arg1, %c0_i32_14 : i32
    %17 = arith.extui %16 : i1 to i32
    %c0_i32_15 = arith.constant 0 : i32
    %18 = arith.cmpi ne, %17, %c0_i32_15 : i32
    scf.if %18 {
      %c0_16 = arith.constant 0 : index
      %c0_17 = arith.constant 0 : index
      %19 = vector.load %arg10[%c0_16, %c0_17] : memref<8x32xf32, #tpu.memory_space<vmem>>, vector<8x32xf32>
      %c0_18 = arith.constant 0 : index
      %c0_19 = arith.constant 0 : index
      %20 = vector.load %arg6[%c0_18, %c0_19] : memref<1x32xf32, #tpu.memory_space<vmem>>, vector<1x32xf32>
      %21 = vector.broadcast %20 : vector<1x32xf32> to vector<8x32xf32>
      %22 = arith.addf %19, %21 : vector<8x32xf32>
      %23 = arith.addf %3, %22 : vector<8x32xf32>
      %cst_20 = arith.constant dense<0.000000e+00> : vector<8xf32>
      %24 = vector.multi_reduction <add>, %23, %cst_20 [1] : vector<8x32xf32> to vector<8xf32>
      %25 = vector.shape_cast %24 : vector<8xf32> to vector<8x1xf32>
      %cst_21 = arith.constant 3.200000e+01 : f32
      %26 = vector.broadcast %cst_21 : f32 to vector<8x1xf32>
      %27 = arith.divf %25, %26 : vector<8x1xf32>
      %28 = vector.broadcast %27 : vector<8x1xf32> to vector<8x32xf32>
      %29 = arith.subf %23, %28 : vector<8x32xf32>
      %30 = arith.mulf %29, %29 : vector<8x32xf32>
      %cst_22 = arith.constant dense<0.000000e+00> : vector<8xf32>
      %31 = vector.multi_reduction <add>, %30, %cst_22 [1] : vector<8x32xf32> to vector<8xf32>
      %32 = vector.shape_cast %31 : vector<8xf32> to vector<8x1xf32>
      %cst_23 = arith.constant 3.200000e+01 : f32
      %33 = vector.broadcast %cst_23 : f32 to vector<8x1xf32>
      %34 = arith.divf %32, %33 : vector<8x1xf32>
      %cst_24 = arith.constant 9.99999974E-6 : f32
      %35 = vector.broadcast %cst_24 : f32 to vector<8x1xf32>
      %36 = arith.addf %34, %35 : vector<8x1xf32>
      %37 = math.rsqrt %36 : vector<8x1xf32>
      %38 = vector.broadcast %37 : vector<8x1xf32> to vector<8x32xf32>
      %39 = arith.mulf %29, %38 : vector<8x32xf32>
      %c0_25 = arith.constant 0 : index
      %c0_26 = arith.constant 0 : index
      %40 = vector.load %arg7[%c0_25, %c0_26] : memref<1x32xf32, #tpu.memory_space<vmem>>, vector<1x32xf32>
      %41 = vector.broadcast %40 : vector<1x32xf32> to vector<8x32xf32>
      %42 = arith.mulf %39, %41 : vector<8x32xf32>
      %c0_27 = arith.constant 0 : index
      %c0_28 = arith.constant 0 : index
      %43 = vector.load %arg8[%c0_27, %c0_28] : memref<1x32xf32, #tpu.memory_space<vmem>>, vector<1x32xf32>
      %44 = vector.broadcast %43 : vector<1x32xf32> to vector<8x32xf32>
      %45 = arith.addf %42, %44 : vector<8x32xf32>
      %c0_29 = arith.constant 0 : index
      %c0_30 = arith.constant 0 : index
      %46 = vector.load %arg9[%c0_29, %c0_30] : memref<8x32xf32, #tpu.memory_space<vmem>>, vector<8x32xf32>
      tpu.vector_store %arg9[%c0_29, %c0_30], %45 {strides = array<i32>} : memref<8x32xf32, #tpu.memory_space<vmem>>, vector<8x32xf32>,
    } else {
    }
    return
  }
  func.func @transform_0(%arg0: i32, %arg1: i32) -> (i32, i32) {
    %c0_i32 = arith.constant 0 : i32
    %c0_i32_0 = arith.constant 0 : i32
    return %arg0, %c0_i32 : i32, i32
  }
  func.func @transform_1(%arg0: i32, %arg1: i32) -> (i32, i32) {
    %c0_i32 = arith.constant 0 : i32
    %c0_i32_0 = arith.constant 0 : i32
    return %c0_i32, %arg1 : i32, i32
  }
  func.func @transform_2(%arg0: i32, %arg1: i32) -> (i32, i32) {
    %c0_i32 = arith.constant 0 : i32
    %c0_i32_0 = arith.constant 0 : i32
    return %c0_i32, %arg1 : i32, i32
  }
  func.func @transform_3(%arg0: i32, %arg1: i32) -> (i32, i32) {
    %c0_i32 = arith.constant 0 : i32
    %c0_i32_0 = arith.constant 0 : i32
    return %arg1, %c0_i32 : i32, i32
  }
  func.func @transform_4(%arg0: i32, %arg1: i32) -> (i32, i32) {
    %c0_i32 = arith.constant 0 : i32
    %c0_i32_0 = arith.constant 0 : i32
    %c0_i32_1 = arith.constant 0 : i32
    return %c0_i32, %c0_i32_0 : i32, i32
  }
  func.func @transform_5(%arg0: i32, %arg1: i32) -> (i32, i32) {
    %c0_i32 = arith.constant 0 : i32
    %c0_i32_0 = arith.constant 0 : i32
    %c0_i32_1 = arith.constant 0 : i32
    return %c0_i32, %c0_i32_0 : i32, i32
  }
  func.func @transform_6(%arg0: i32, %arg1: i32) -> (i32, i32) {
    %c0_i32 = arith.constant 0 : i32
    %c0_i32_0 = arith.constant 0 : i32
    %c0_i32_1 = arith.constant 0 : i32
    return %c0_i32, %c0_i32_0 : i32, i32
  }
  func.func @transform_7(%arg0: i32, %arg1: i32) -> (i32, i32) {
    %c0_i32 = arith.constant 0 : i32
    %c0_i32_0 = arith.constant 0 : i32
    return %arg0, %c0_i32 : i32, i32
  }
}

</mosaic_0001>

<bundles_post_ra>
// kernel: tpu_custom_call.1
= control target key start
LH: loop header
LB: loop body
LE: loop exit
PB: predicated region body
PF: predicated region fallthrough
CT: control target
= control target key end

     0   :  { %12 = vsyncpa [#allocation4], 0  ;;  %s970_s0 = inlined_call_operand.vmem [shape: f32[16,32], index: 0, kind: input, shape index: {}]   ;;  %s971_s1 = inlined_call_operand.vmem [shape: f32[32,128], index: 1, kind: input, shape index: {}]   ;;  %s972_s2 = inlined_call_operand.vmem [shape: f32[1,128], index: 2, kind: input, shape index: {}]   ;;  %s973_s3 = inlined_call_operand.vmem [shape: f32[128,32], index: 3, kind: input, shape index: {}]   ;;  %s974_s4 = inlined_call_operand.vmem [shape: f32[1,32], index: 4, kind: input, shape index: {}]   ;;  %s975_s5 = inlined_call_operand.vmem [shape: f32[1,32], index: 5, kind: input, shape index: {}]   ;;  %s976_s6 = inlined_call_operand.vmem [shape: f32[1,32], index: 6, kind: input, shape index: {}]   ;;  %s977_s7 = inlined_call_operand.hbm [shape: f32[16,32], index: 7, kind: output, shape index: {}]  }
   0x1   :  { %14 = vsyncpa [#allocation4 + $0x1], 0  ;;  %s795_s24 = smov 0   ;;  %s797_s25 = smov 0  }
   0x2   :  { %s799_s26 = smov 0   ;;  %s801_s27 = smov 0  }
   0x3   :  { %s803_s28 = smov 0   ;;  %s805_s29 = smov 0  }
   0x4 LB: > { %s593_s30 = sadd.s32 4294967295, %s751_s29   ;;  %s594_s8 = sadd.s32 4294967294, %s751_s29   ;;  %s751_s29 = sphi %s805_s29, %s20_s29   ;;  %s747_s28 = sphi %s803_s28, %s984_s28   ;;  %s743_s27 = sphi %s801_s27, %s983_s27   ;;  %s739_s26 = sphi %s799_s26, %s982_s26   ;;  %s735_s25 = sphi %s797_s25, %s981_s25   ;;  %s731_s24 = sphi %s795_s24, %s980_s24  }
   0x5   : > { %s32_s9 = sadd.s32 1, %s747_s28  ;;  %s206_s10 = sadd.s32 1, %s739_s26 }
   0x6   : > { %p34_p0 = scmp.ge.s32.totalorder %s32_s9, 2  ;;  %p216_p1 = scmp.ne.s32.totalorder %s739_s26, %s735_s25 }
   0x7   : > { %p217_p2 = scmp.eq.s32.totalorder %s593_s30, 1  ;;  %p222_p3 = scmp.ne.s32.totalorder %s735_s25, %s731_s24 }
   0x8   : > { %s986_s9 = smov (%p34_p0, %s32_s9), 0  ;;  %p223_p5 = scmp.eq.s32.totalorder %s594_s8, 1 }
   0x9   : > { %p835_p4 = por %p217_p2, %p216_p1  ;;  %s203_s12 = ssub.s32 %s747_s28, %s986_s9 }
   0xa   : > { %p600_p6 = scmp.ge.s32.totalorder %s751_s29, 1  ;;  %p204_p7 = scmp.eq.s32.totalorder %s203_s12, 0 }
   0xb   : > { %p842_p8 = por %p223_p5, %p222_p3  ;;  %p279_p9 = scmp.lt.s32.totalorder %s751_s29, 3 }
   0xc   : > { %s848_s14 = scalar_select %p204_p7, %s739_s26, %s206_s10  }
   0xd   : > { %p280_p10 = pnand %p600_p6, %p279_p9 }
   0xe   : > { %p322_p11 = scmp.lt.s32.totalorder (!%p280_p10), %s743_s27, 1  ;;  %s605_s12 = sshll.u32 (!%p280_p10), %s743_s27, 3 }
   0xf   : > { %283 = sbr.rel (%p280_p10) target bundleno = 569 (0x239), region = 48  ;;  %s479_s19 = scalar_lea.hbm (!%p280_p10), %s977_s7, %s605_s12 }
  0x10   : > { %s483_s23 = sshll.u32 (!%p280_p10), %s479_s19, 4  ;;  %s484_s23 = int_to_ptr.hbm [resolvable:$true] %s483_s23 }
  0x11   : > { %s687_s15 = sshra.s32 (!%p280_p10), %s484_s23, 4  ;;  %s688_s15 = int_to_ptr.hbm [resolvable:$true] %s687_s15 }
  0x12   : > { %s689_s12 = scalar_lea.hbm (!%p280_p10), %s688_s15, 8  ;;  %p694_p1 = scmp.lt.s32.totalorder (!%p280_p10), %s688_s15, %s977_s7 }
  0x13   : > { %p690_p12 = scmp.ne.s32.totalorder (!%p280_p10), %s688_s15, %s689_s12 }
  0x14   : > { %v349_v0 = vld [vmem:[%s971_s1 + $0x18] sm:$0xff]  ;;  %v348_v1 = vld [vmem:[%s971_s1 + $0x10] sm:$0xff]  ;;  %v347_v4 = vld [vmem:[%s971_s1 + $0x8] sm:$0xff]  ;;  %s323_s8 = scalar_select %p322_p11, %s743_s27, 1  ;;  %vm343_vm0 = vcmask 261120   ;;  %v753_v21 = vmov 0.0  }
  0x15   : > { %370 = vmatpush.msra.mxu0 %v349_v0  ;;  %v395_v2 = vld [vmem:[%s973_s3 + $0x78] sm:$0xff]  ;;  %v394_v3 = vld [vmem:[%s973_s3 + $0x70] sm:$0xff]  ;;  %v393_v5 = vld [vmem:[%s973_s3 + $0x68] sm:$0xff]  ;;  %344 = vst.msk [vmem:[#allocation2] sm:$0xff] %vm343_vm0, %v753_v21  ;;  %v754_v34 = vmov 32.0   ;;  %p691_p13 = pnand %p690_p12, %p835_p4 }
  0x16   : > { %396 = vmatpush.msra.mxu1 %v395_v2  ;;  %v346_v6 = vld [vmem:[%s971_s1] sm:$0xff]  ;;  %s602_s17 = sshll.u32 %s323_s8, 3  ;;  %v391_v9 = vld [vmem:[%s973_s3 + $0x58] sm:$0xff]  ;;  %v390_v10 = vld [vmem:[%s973_s3 + $0x50] sm:$0xff]  ;;  %669 = vrcp.f32 %v754_v34  ;;  %s319_s8 = sand.u32 1, %s735_s25  }
  0x17   : > { %371 = vmatpush.msra.mxu0 %v348_v1  ;;  %s325_s20 = scalar_lea.vmem %s970_s0, %s602_s17  ;;  %v392_v7 = vld [vmem:[%s973_s3 + $0x60] sm:$0xff]  ;;  %v389_v11 = vld [vmem:[%s973_s3 + $0x48] sm:$0xff]  ;;  %v387_v13 = vld [vmem:[%s973_s3 + $0x38] sm:$0xff]  ;;  %s601_s10 = sshll.u32 %s319_s8, 3 }
  0x18   : > { %397 = vmatpush.msra.mxu1 %v394_v3  ;;  %v345_v8 = vld [vmem:[%s325_s20] sm:$0xff]  ;;  %v386_v14 = vld [vmem:[%s973_s3 + $0x30] sm:$0xff]  ;;  %v385_v15 = vld [vmem:[%s973_s3 + $0x28] sm:$0xff]  ;;  %s321_s22 = scalar_lea.vmem [#allocation3], %s601_s10  ;;  %s469_s30 = scalar_lea.sflag [#allocation4], %s319_s8 }
  0x19   : > { %372 = vmatpush.msra.mxu0 %v347_v4  ;;  %v388_v12 = vld [vmem:[%s973_s3 + $0x40] sm:$0xff]  ;;  %v383_v17 = vld [vmem:[%s973_s3 + $0x18] sm:$0xff]  ;;  %v382_v18 = vld [vmem:[%s973_s3 + $0x10] sm:$0xff]  ;;  %s481_s27 = sshll.u32 %s321_s22, 4  ;;  %p692_p0 = pneg %p691_p13  ;;  %s482_s27 = int_to_ptr.vmem [resolvable:$true] %s481_s27 }
  0x1a   : > { %398 = vmatpush.msra.mxu1 %v393_v5  ;;  %v384_v16 = vld [vmem:[%s973_s3 + $0x20] sm:$0xff]  ;;  %v381_v19 = vld [vmem:[%s973_s3 + $0x8] sm:$0xff]  ;;  %s693_s10 = scalar_lea.hbm %s977_s7, 16 }
  0x1b   : > { %373 = vmatpush.msra.mxu0 %v346_v6  ;;  %v380_v20 = vld [vmem:[%s973_s3] sm:$0xff]  ;;  %p695_p2 = scmp.lt.s32.totalorder %s693_s10, %s689_s12 }
  0x1c   : > { %603 = vmatmul.msk.f32.vlgmr.msra.gmra.mxu0 %vm343_vm0, %v345_v8  ;;  %399 = vmatpush.msra.mxu1 %v392_v7  ;;  %v665_v22 = vld [vmem:[%s972_s2] ss:$0 sm:$0xff]  ;;  %v670_v35 = vpop.eup %669 }
  0x1d   : > { %v379_v26 = vld [vmem:[#allocation2] sm:$0xff]  ;;  %v432_v36 = vmul.f32 32.0, %v670_v35  ;;  %vm436_vm1 = vweird.f32 %v670_v35  ;;  %p696_p3 = por %p695_p2, %p694_p1 }
  0x1e   : > { %400 = vmatpush.msra.mxu1 %v391_v9  ;;  %v666_v29 = vld [vmem:[%s974_s4] ss:$0 sm:$0xff] }
  0x1f   : > { %v433_v37 = vsub.f32 1.0, %v432_v36  ;;  %v667_v55 = vld [vmem:[%s975_s5] ss:$0 sm:$0xff]  ;;  %p697_p5 = pnand %p696_p3, %p692_p0 }
  0x20   : > { %401 = vmatpush.msra.mxu1 %v390_v10  ;;  %v668_v58 = vld [vmem:[%s976_s6] ss:$0 sm:$0xff] }
  0x21   : > { %v434_v38 = vmul.f32 %v670_v35, %v433_v37 }
  0x22   : > { %402 = vmatpush.msra.mxu1 %v389_v11 }
  0x23   : > { %v435_v39 = vadd.f32 %v670_v35, %v434_v38 }
  0x24   : > { %403 = vmatpush.msra.mxu1 %v388_v12 }
  0x25   : > { %v437_v40 = vsel %vm436_vm1, %v670_v35, %v435_v39 }
  0x26   : > { %404 = vmatpush.msra.mxu1 %v387_v13 }
  0x28   : > { %405 = vmatpush.msra.mxu1 %v386_v14 }
  0x2a   : > { %406 = vmatpush.msra.mxu1 %v385_v15 }
  0x2c   : > { %407 = vmatpush.msra.mxu1 %v384_v16 }
  0x2e   : > { %408 = vmatpush.msra.mxu1 %v383_v17 }
  0x30   : > { %409 = vmatpush.msra.mxu1 %v382_v18 }
  0x32   : > { %410 = vmatpush.msra.mxu1 %v381_v19 }
  0x34   : > { %411 = vmatpush.msra.mxu1 %v380_v20 }
  0x99   : > { %v375_v23 = vpop.f32.mrf.mxu0 }
  0x9a   : > { %v376_v24 = vadd.f32 %v665_v22, %v375_v23 }
  0x9c   : > { %v378_v25 = vmax.f32 %v376_v24, 0.0 }
  0x9e   : > { %412 = vmatmul.f32.vlgmr.msra.gmra.mxu1 %v378_v25 }
 0x11b   : > { %v413_v27 = vpop.f32.mrf.mxu1 }
 0x11c   : > { %v416_v28 = vadd.f32 %v413_v27, %v379_v26 }
 0x11e   : > { %417 = vst.msk [vmem:[#allocation2] sm:$0xff] %vm343_vm0, %v416_v28 }
 0x125   : > { %v421_v30 = vld [vmem:[#allocation2] sm:$0xff] }
 0x126   : > { %v426_v31 = vadd.f32 %v666_v29, %v421_v30 }
 0x128   : > { %v427_v32 = vadd.f32 %v426_v31, %v345_v8 }
 0x12a   : > { %v428_v33 = vsel %vm343_vm0, %v427_v32, 0.0 }
 0x12b   : > { %429 = vadd.xlane.f32.xlu0 %v428_v33 }
 0x19e   : > { %v430_v41 = vpop.xlane.xlu0 %429 }
 0x19f   : > { %v438_v42 = vmul.f32 %v437_v40, %v430_v41 }
 0x1a1   : > { %v439_v43 = vsub.f32 %v427_v32, %v438_v42 }
 0x1a3   : > { %v440_v44 = vmul.f32 %v439_v43, %v439_v43 }
 0x1a5   : > { %v441_v45 = vsel %vm343_vm0, %v440_v44, 0.0 }
 0x1a6   : > { %442 = vadd.xlane.f32.xlu0 %v441_v45 }
 0x219   : > { %v443_v46 = vpop.xlane.xlu0 %442 }
 0x21a   : > { %v444_v47 = vmul.f32 %v443_v46, %v437_v40 }
 0x21c   : > { %v445_v48 = vadd.f32 1e-05, %v444_v47 }
 0x21e   : > { %671 = vrsqrt.f32 %v445_v48  ;;  %vm452_vm3 = vweird.f32 %v445_v48 }
 0x224   : > { %v672_v49 = vpop.eup %671 }
 0x225   : > { %v447_v50 = vmul.f32 %v672_v49, %v445_v48  ;;  %vm453_vm2 = vweird.f32 %v672_v49 }
 0x226   : > { %vm454_vm4 = vmor %vm452_vm3, %vm453_vm2 }
 0x227   : > { %v448_v51 = vmul.f32 %v672_v49, %v447_v50 }
 0x229   : > { %v449_v52 = vmul.f32 0.5, %v448_v51 }
 0x22b   : > { %v450_v53 = vsub.f32 1.5, %v449_v52 }
 0x22d   : > { %v451_v54 = vmul.f32 %v672_v49, %v450_v53 }
 0x22f   : > { %v455_v56 = vsel %vm454_vm4, %v672_v49, %v451_v54 }
 0x230   : > { %v456_v57 = vmul.f32 %v455_v56, %v439_v43 }
 0x232   : > { %v461_v59 = vmul.f32 %v667_v55, %v456_v57 }
 0x234   : > { %v466_v60 = vadd.f32 %v668_v58, %v461_v59 }
 0x236   : > { %467 = vst.msk [vmem:[%s321_s22] sm:$0xff] %vm343_vm0, %v466_v60 }
 0x237   : > { %700 = shalt.err (!%p697_p5)
}
 0x238   : > { %608 = dma.vmem_to_hbm [thread:$0]  (%p835_p4), %s482_s27, 128, %s484_s23, %s469_s30  }
 0x239 PF: > { %p614_p6 = scmp.ge.s32.totalorder %s751_s29, 2  ;;  %s495_s8 = sand.u32 1, %s731_s24  }
 0x23a   : > { %s496_s20 = scalar_lea.sflag [#allocation4], %s495_s8 }
 0x23b   : > { %p611_p7 = pnand %p614_p6, %p842_p8 }
 0x23d   : > { %p612_p9 = pneg %p611_p7 }
 0x23f   : > { %726 = dma.done.wait (%p612_p9), %s496_s20, 128  }
 0x240   : > { %728 = vsyncadd (%p612_p9), %s496_s20, 4294967168  ;;  %s20_s29 = sadd.s32 1, %s751_s29   ;;  %s980_s24 = smov %s735_s25 }
 0x241   : > { %p17_p10 = scmp.ge.s32.totalorder %s20_s29, 4   ;;  %s981_s25 = smov %s739_s26 }
 0x242   : > { %s982_s26 = smov %s848_s14  ;;  %s983_s27 = smov %s747_s28 }
 0x243   : > { %s984_s28 = smov %s986_s9  ;;  %19 = sbr.rel (!%p17_p10) target bundleno = 4 (0x4), region = 100 }
 0x248   :  { %502 = vsyncpa [#allocation4], 1 }
 0x249   :  { %504 = vsyncpa [#allocation4 + $0x1], 1 }

</bundles_post_ra>
